<compile_context>
chip_gen: v7x
topology: tpu7x:2x2x1
jax: 0.10.0
libtpu: 0.0.40
codegen_flags: <defaults>
</compile_context>

<pallas_src>
import functools
import math

import numpy as np
import jax
import jax.numpy as jnp
from jax.experimental import pallas as pl
from jax.experimental.pallas import tpu as pltpu

# -------------------- module hyper-parameters (deterministic) --------------------
NUM_CLASSES = 6
ANCHORS = [1.08, 1.19, 3.42, 4.41, 6.63, 11.38, 9.42, 5.11, 16.62, 10.52]
NUM_ANCHORS = 5
ANCHOR_STEP = len(ANCHORS) // NUM_ANCHORS       # 2
ANCHOR_W = [float(ANCHORS[ANCHOR_STEP * n]) for n in range(NUM_ANCHORS)]
ANCHOR_H = [float(ANCHORS[ANCHOR_STEP * n + 1]) for n in range(NUM_ANCHORS)]
COORD_SCALE = 1.0
NOOBJECT_SCALE = 1.0
OBJECT_SCALE = 5.0
CLASS_SCALE = 1.0
THRESH = 0.6
SEEN = 0
MAX_GT = 50

LANE = 128
PAD_LOGIT = -20.0   # sigmoid(-20) ~ 2e-9 (< 0.25), exp(-20) ~ 2e-9: pad lanes inert

VSPEC = pl.BlockSpec(memory_space=pltpu.MemorySpace.VMEM)


# ============================ Pallas kernels ============================

def _pred_boxes_kernel(raw_ref, gx_ref, gy_ref, aw_ref, ah_ref, pb_ref):
    """Decode pred_boxes from the raw packed slab.

    raw_ref: (5+nC, nBA, nHW_pad) raw logits (only planes 0..3 are read).
    gx_ref/gy_ref: (1, nHW_pad) grid coordinates (broadcast along sublanes).
    aw_ref/ah_ref: (nBA, 1) per-row anchor sizes (broadcast along lanes).
    pb_ref: (4, nBA, nHW_pad) decoded [x, y, w, h].
    Padded lanes carry garbage grid coords; they are stripped on device before use.
    """
    xs = jax.nn.sigmoid(raw_ref[0])
    ys = jax.nn.sigmoid(raw_ref[1])
    pb_ref[0] = xs + gx_ref[...]
    pb_ref[1] = ys + gy_ref[...]
    pb_ref[2] = jnp.exp(raw_ref[2]) * aw_ref[...]
    pb_ref[3] = jnp.exp(raw_ref[3]) * ah_ref[...]


@functools.lru_cache(maxsize=None)
def _make_loss_kernel(nC):
    """Fused activations + all six loss reductions + proposal count.

    raw_ref : (5+nC, nBA, nHW_pad) raw network output (channels-major).
    tgt_ref : (9,    nBA, nHW_pad) = [tx, ty, tw, th, tconf, coord_mask,
                                      sqrt(conf_mask), cls_mask, tcls].
    out_ref : (1, 128) f32, lanes 0..6 = lx, ly, lw, lh, lconf, lcls, nProposals.
    """
    def kernel(raw_ref, tgt_ref, out_ref):
        xs = jax.nn.sigmoid(raw_ref[0])
        ys = jax.nn.sigmoid(raw_ref[1])
        ws = raw_ref[2]
        hs = raw_ref[3]
        conf = jax.nn.sigmoid(raw_ref[4])

        tx = tgt_ref[0]
        ty = tgt_ref[1]
        tw = tgt_ref[2]
        th = tgt_ref[3]
        tconf = tgt_ref[4]
        cm = tgt_ref[5]
        cfm = tgt_ref[6]                  # sqrt(conf_mask) precomputed on host
        sel = tgt_ref[7]                  # cls_mask as 0/1 float
        tcls = tgt_ref[8]                 # float class id (exact small ints)

        lx = 0.5 * COORD_SCALE * jnp.sum((cm * (xs - tx)) ** 2, keepdims=True)
        ly = 0.5 * COORD_SCALE * jnp.sum((cm * (ys - ty)) ** 2, keepdims=True)
        lw = 0.5 * COORD_SCALE * jnp.sum((cm * (ws - tw)) ** 2, keepdims=True)
        lh = 0.5 * COORD_SCALE * jnp.sum((cm * (hs - th)) ** 2, keepdims=True)
        lconf = 0.5 * jnp.sum((cfm * (conf - tconf)) ** 2, keepdims=True)

        # CrossEntropyLoss(reduction='sum') over masked cells, lane-dense.
        # Two passes re-reading raw_ref[5+c] keep the live vreg set small
        # (extra vlds are nearly free; spills are not).
        m = raw_ref[5]
        for c in range(1, nC):
            m = jnp.maximum(m, raw_ref[5 + c])
        se = jnp.zeros_like(m)
        picked = jnp.zeros_like(m)
        for c in range(nC):
            logit_c = raw_ref[5 + c]
            se = se + jnp.exp(logit_c - m)
            picked = jnp.where(tcls == float(c), logit_c, picked)
        lse = m + jnp.log(se)
        lcls = CLASS_SCALE * jnp.sum(sel * (lse - picked), keepdims=True)

        nprop = jnp.sum((conf > 0.25).astype(jnp.float32), keepdims=True)

        lane = jax.lax.broadcasted_iota(jnp.int32, (1, LANE), 1)
        packed = jnp.where(lane == 0, lx, 0.0)
        packed = jnp.where(lane == 1, ly, packed)
        packed = jnp.where(lane == 2, lw, packed)
        packed = jnp.where(lane == 3, lh, packed)
        packed = jnp.where(lane == 4, lconf, packed)
        packed = jnp.where(lane == 5, lcls, packed)
        packed = jnp.where(lane == 6, nprop, packed)
        out_ref[...] = packed
    return kernel


# ============================ cached jitted device stages ============================

@functools.lru_cache(maxsize=None)
def _get_stage1_fn(nB, nH, nW):
    """Repack + pred-box decode + dense conf_mask first pass (one compiled fn)."""
    nA, nC = NUM_ANCHORS, NUM_CLASSES
    nHW = nH * nW
    nBA = nB * nA
    nHW_pad = ((nHW + LANE - 1) // LANE) * LANE

    pred_call = pl.pallas_call(
        _pred_boxes_kernel,
        out_shape=jax.ShapeDtypeStruct((4, nBA, nHW_pad), jnp.float32),
        in_specs=[VSPEC, VSPEC, VSPEC, VSPEC, VSPEC],
        out_specs=VSPEC,
    )

    # Tiny grid / anchor constants, baked into the compiled executable.
    col = np.arange(nHW_pad, dtype=np.int64)
    gx_row = (col % nW).astype(np.float32)[None, :]          # (1, nHW_pad)
    gy_row = (col // nW).astype(np.float32)[None, :]         # (1, nHW_pad)
    a_idx = np.arange(nBA) % nA
    aw_col = np.asarray(ANCHOR_W, np.float32)[a_idx][:, None]  # (nBA, 1)
    ah_col = np.asarray(ANCHOR_H, np.float32)[a_idx][:, None]  # (nBA, 1)

    def stage1(output, gt_boxes, gt_valid):
        # output: (nB, nA*(5+nC), nH, nW) raw logits
        out5 = output.reshape(nBA, 5 + nC, nHW)
        out_pack = jnp.transpose(out5, (1, 0, 2))             # (5+nC, nBA, nHW)
        if nHW_pad != nHW:
            out_pack = jnp.pad(out_pack, ((0, 0), (0, 0), (0, nHW_pad - nHW)),
                               constant_values=PAD_LOGIT)

        pb = pred_call(out_pack,
                       jnp.asarray(gx_row), jnp.asarray(gy_row),
                       jnp.asarray(aw_col), jnp.asarray(ah_col))
        # Strip the pad lanes on device; (4, nBA*nHW) layout is consumed
        # column-wise by build_targets (no host transpose copy, smaller D2H).
        pb_flat = pb[:, :, :nHW].reshape(4, nBA * nHW)

        # -------- dense first pass of build_targets, on device --------
        # conf_mask base: noobject_scale everywhere, 0 where max-IoU vs any
        # (valid) GT exceeds the silence threshold.
        pbb = pb_flat.reshape(4, nB, nA * nHW)                 # (4, nB, nAnchors)
        px = pbb[0][:, None, :]
        py = pbb[1][:, None, :]
        pw = pbb[2][:, None, :]
        ph = pbb[3][:, None, :]
        gx = gt_boxes[:, :, 0:1]
        gy = gt_boxes[:, :, 1:2]
        gw = gt_boxes[:, :, 2:3]
        gh = gt_boxes[:, :, 3:4]
        mx = jnp.minimum(px - pw * 0.5, gx - gw * 0.5)
        Mx = jnp.maximum(px + pw * 0.5, gx + gw * 0.5)
        my = jnp.minimum(py - ph * 0.5, gy - gh * 0.5)
        My = jnp.maximum(py + ph * 0.5, gy + gh * 0.5)
        cw = pw + gw - (Mx - mx)
        ch = ph + gh - (My - my)
        carea = jnp.where((cw <= 0) | (ch <= 0), 0.0, cw * ch)
        uarea = pw * ph + gw * gh - carea
        iou = carea / jnp.where(uarea == 0, 1.0, uarea)        # (nB, 50, nAnchors)
        iou = jnp.where(gt_valid[:, :, None], iou, 0.0)
        cur_ious = jnp.max(iou, axis=1)                        # (nB, nAnchors)
        conf_mask0 = jnp.where(cur_ious > THRESH,
                               jnp.float32(0.0), jnp.float32(NOOBJECT_SCALE))
        return out_pack, pb_flat, conf_mask0

    return jax.jit(stage1)


@functools.lru_cache(maxsize=None)
def _get_stage2_fn(nBA, nHW_pad, nC):
    loss_call = pl.pallas_call(
        _make_loss_kernel(nC),
        out_shape=jax.ShapeDtypeStruct((1, LANE), jnp.float32),
        in_specs=[VSPEC, VSPEC],
        out_specs=VSPEC,
    )
    return jax.jit(loss_call)


# ============================ host-side target building ============================

def bbox_iou_np(box1, box2, x1y1x2y2=True):
    if x1y1x2y2:
        mx = min(box1[0], box2[0]); Mx = max(box1[2], box2[2])
        my = min(box1[1], box2[1]); My = max(box1[3], box2[3])
        w1 = box1[2] - box1[0]; h1 = box1[3] - box1[1]
        w2 = box2[2] - box2[0]; h2 = box2[3] - box2[1]
    else:
        mx = min(box1[0] - box1[2] / 2.0, box2[0] - box2[2] / 2.0)
        Mx = max(box1[0] + box1[2] / 2.0, box2[0] + box2[2] / 2.0)
        my = min(box1[1] - box1[3] / 2.0, box2[1] - box2[3] / 2.0)
        My = max(box1[1] + box1[3] / 2.0, box2[1] + box2[3] / 2.0)
        w1, h1, w2, h2 = box1[2], box1[3], box2[2], box2[3]
    uw = Mx - mx; uh = My - my
    cw = w1 + w2 - uw; ch = h1 + h2 - uh
    if cw <= 0 or ch <= 0:
        return 0.0
    area1 = w1 * h1; area2 = w2 * h2
    carea = cw * ch
    uarea = area1 + area2 - carea
    return float(carea / uarea)


def build_targets_np(pred_boxes_cols, conf_mask_base, target, anchors, num_anchors,
                     num_classes, nH, nW, object_scale, seen):
    """Second (scalar, data-dependent) pass of build_targets.

    pred_boxes_cols : (4, nB*nA*nH*nW) decoded boxes (column-wise access).
    conf_mask_base  : (nB, nA, nH, nW) conf_mask from the device-side first pass.
    """
    nB = target.shape[0]
    nA = num_anchors
    anchor_step = len(anchors) // num_anchors
    conf_mask = conf_mask_base.astype(np.float32).copy()
    coord_mask = np.zeros((nB, nA, nH, nW), np.float32)
    cls_mask = np.zeros((nB, nA, nH, nW), np.float32)
    tx = np.zeros((nB, nA, nH, nW), np.float32)
    ty = np.zeros((nB, nA, nH, nW), np.float32)
    tw = np.zeros((nB, nA, nH, nW), np.float32)
    th = np.zeros((nB, nA, nH, nW), np.float32)
    tconf = np.zeros((nB, nA, nH, nW), np.float32)
    tcls = np.zeros((nB, nA, nH, nW), np.float32)
    nAnchors = nA * nH * nW
    nPixels = nH * nW
    if seen < 12800:
        tx.fill(0.5); ty.fill(0.5)
        tw.fill(0.0); th.fill(0.0)
        coord_mask.fill(1.0)
    nGT = 0
    nCorrect = 0
    for b in range(nB):
        for t in range(MAX_GT):
            if target[b][t * 5 + 1] == 0:
                break
            nGT += 1
            best_iou = 0.0
            best_n = -1
            gx = target[b][t * 5 + 1] * nW
            gy = target[b][t * 5 + 2] * nH
            gi = int(gx)
            gj = int(gy)
            gw = target[b][t * 5 + 3] * nW
            gh = target[b][t * 5 + 4] * nH
            gt_box = [0, 0, gw, gh]
            for n in range(nA):
                aw = anchors[anchor_step * n]
                ah = anchors[anchor_step * n + 1]
                anchor_box = [0, 0, aw, ah]
                iou = bbox_iou_np(anchor_box, gt_box, x1y1x2y2=False)
                if iou > best_iou:
                    best_iou = iou
                    best_n = n
            gt_box = [gx, gy, gw, gh]
            pred_box = pred_boxes_cols[:, b * nAnchors + best_n * nPixels + gj * nW + gi]
            coord_mask[b][best_n][gj][gi] = 1
            cls_mask[b][best_n][gj][gi] = 1
            conf_mask[b][best_n][gj][gi] = object_scale
            tx[b][best_n][gj][gi] = target[b][t * 5 + 1] * nW - gi
            ty[b][best_n][gj][gi] = target[b][t * 5 + 2] * nH - gj
            tw[b][best_n][gj][gi] = math.log(gw / anchors[anchor_step * best_n])
            th[b][best_n][gj][gi] = math.log(gh / anchors[anchor_step * best_n + 1])
            iou = bbox_iou_np(gt_box, pred_box, x1y1x2y2=False)
            tconf[b][best_n][gj][gi] = iou
            tcls[b][best_n][gj][gi] = target[b][t * 5]
            if iou > 0.5:
                nCorrect += 1
    return (nGT, nCorrect, coord_mask, conf_mask, cls_mask,
            tx, ty, tw, th, tconf, tcls)


# ============================ forward ============================

def region_loss_forward(output, target_np):
    output = jnp.asarray(output, jnp.float32)
    nB, nCh, nH, nW = output.shape
    nA, nC = NUM_ANCHORS, NUM_CLASSES
    assert nCh == nA * (5 + nC)
    nHW = nH * nW
    nBA = nB * nA
    nHW_pad = ((nHW + LANE - 1) // LANE) * LANE

    # Pad-lane inertness guard (nProposals / lconf correctness coupling).
    assert 1.0 / (1.0 + math.exp(-PAD_LOGIT)) < 0.25

    # Host prep of GT boxes for the device-side first pass (tiny arrays).
    # Exact `break` semantics: a GT is valid only if all earlier x's are nonzero.
    tgt = np.asarray(target_np, np.float32).reshape(nB, -1)
    raw = tgt[:, :MAX_GT * 5].reshape(nB, MAX_GT, 5)
    gt_valid_np = np.cumprod((raw[:, :, 1] != 0).astype(np.int32), axis=1) > 0
    gt_boxes_np = np.stack([raw[:, :, 1] * nW, raw[:, :, 2] * nH,
                            raw[:, :, 3] * nW, raw[:, :, 4] * nH],
                           axis=-1).astype(np.float32)

    # ---------------- stage 1 (cached jit): repack + decode + conf_mask base -------
    stage1 = _get_stage1_fn(nB, nH, nW)
    out_pack, pb_flat, conf_mask0 = stage1(output,
                                           jnp.asarray(gt_boxes_np),
                                           jnp.asarray(gt_valid_np))
    pb_flat = jax.block_until_ready(pb_flat)
    conf_mask0 = jax.block_until_ready(conf_mask0)
    pred_boxes = np.asarray(pb_flat)                          # (4, nBA*nHW)
    conf_mask_base = np.asarray(conf_mask0).reshape(nB, nA, nH, nW)

    # ---------------- host glue: per-GT scalar pass of build_targets ----------------
    (nGT, nCorrect, coord_mask, conf_mask, cls_mask,
     tx, ty, tw_t, th_t, tconf, tcls) = build_targets_np(
        pred_boxes, conf_mask_base, target_np, ANCHORS, nA, nC, nH, nW,
        OBJECT_SCALE, SEEN)

    # Single packed target/mask slab -> one H2D transfer; sqrt(conf_mask) hoisted.
    # Pad region stays zero-filled so padded lanes are inert in every reduction.
    tgt_pack = np.zeros((9, nBA, nHW_pad), np.float32)
    tgt_pack[0, :, :nHW] = tx.reshape(nBA, nHW)
    tgt_pack[1, :, :nHW] = ty.reshape(nBA, nHW)
    tgt_pack[2, :, :nHW] = tw_t.reshape(nBA, nHW)
    tgt_pack[3, :, :nHW] = th_t.reshape(nBA, nHW)
    tgt_pack[4, :, :nHW] = tconf.reshape(nBA, nHW)
    tgt_pack[5, :, :nHW] = coord_mask.reshape(nBA, nHW)
    tgt_pack[6, :, :nHW] = np.sqrt(conf_mask).reshape(nBA, nHW)
    tgt_pack[7, :, :nHW] = (cls_mask.reshape(nBA, nHW) == 1).astype(np.float32)
    tgt_pack[8, :, :nHW] = tcls.reshape(nBA, nHW)
    if nHW_pad != nHW:
        assert not tgt_pack[:, :, nHW:].any()
    tgt_j = jnp.asarray(tgt_pack)

    # ---------------- stage 2 (cached jit): fused activations + loss reductions ----
    stage2 = _get_stage2_fn(nBA, nHW_pad, nC)
    sums = stage2(out_pack, tgt_j)
    sums = jax.block_until_ready(sums)
    s = np.asarray(sums)[0]
    loss_x, loss_y, loss_w, loss_h, loss_conf, loss_cls = (float(v) for v in s[:6])
    nProposals = int(round(float(s[6])))
    loss = loss_x + loss_y + loss_w + loss_h + loss_conf + loss_cls

    stats = dict(nGT=nGT, nCorrect=nCorrect, nProposals=nProposals,
                 loss_x=loss_x, loss_y=loss_y, loss_w=loss_w, loss_h=loss_h,
                 loss_conf=loss_conf, loss_cls=loss_cls, loss=loss)
    aux = (coord_mask, conf_mask, cls_mask, tx, ty, tw_t, th_t, tconf, tcls)
    return loss, stats, aux


def _reference_loss_from_targets(output_np, aux):
    """NumPy float64 reference (post-build_targets) for a sanity check."""
    coord_mask, conf_mask, cls_mask, tx, ty, tw_t, th_t, tconf, tcls = aux
    nB, nCh, nH, nW = output_np.shape
    nA, nC = NUM_ANCHORS, NUM_CLASSES
    nHW = nH * nW
    nBA = nB * nA
    out5 = output_np.reshape(nBA, 5 + nC, nHW).astype(np.float64)
    sig = lambda z: 1.0 / (1.0 + np.exp(-z))
    x = sig(out5[:, 0]); y = sig(out5[:, 1])
    w = out5[:, 2]; h = out5[:, 3]
    conf = sig(out5[:, 4])
    cls = np.transpose(out5[:, 5:, :], (0, 2, 1)).reshape(nBA * nHW, nC)

    cm = coord_mask.reshape(nBA, nHW)
    cfm = np.sqrt(conf_mask.reshape(nBA, nHW))
    lx = 0.5 * COORD_SCALE * np.sum((cm * (x - tx.reshape(nBA, nHW))) ** 2)
    ly = 0.5 * COORD_SCALE * np.sum((cm * (y - ty.reshape(nBA, nHW))) ** 2)
    lw = 0.5 * COORD_SCALE * np.sum((cm * (w - tw_t.reshape(nBA, nHW))) ** 2)
    lh = 0.5 * COORD_SCALE * np.sum((cm * (h - th_t.reshape(nBA, nHW))) ** 2)
    lconf = 0.5 * np.sum((cfm * (conf - tconf.reshape(nBA, nHW))) ** 2)

    mask = cls_mask.reshape(-1) == 1
    sel_logits = cls[mask]
    labels = tcls.reshape(-1)[mask].astype(np.int64)
    m = sel_logits.max(axis=-1, keepdims=True)
    lse = m[:, 0] + np.log(np.exp(sel_logits - m).sum(axis=-1))
    lcls = CLASS_SCALE * np.sum(lse - sel_logits[np.arange(len(labels)), labels])
    return float(lx + ly + lw + lh + lconf + lcls)


if __name__ == "__main__":
    nB, nH, nW = 2, 8, 8
    nCh = NUM_ANCHORS * (5 + NUM_CLASSES)          # 55

    key = jax.random.PRNGKey(0)
    output = jax.random.normal(key, (nB, nCh, nH, nW), dtype=jnp.float32)

    # target: (nB, 250) -> 50 boxes of [cls, x, y, w, h]; x == 0 marks end.
    target_np = np.zeros((nB, 250), np.float32)
    boxes = {
        0: [(1.0, 0.30, 0.40, 0.20, 0.25),
            (3.0, 0.62, 0.55, 0.35, 0.40),
            (0.0, 0.80, 0.20, 0.10, 0.15)],
        1: [(2.0, 0.45, 0.70, 0.50, 0.30),
            (5.0, 0.15, 0.25, 0.12, 0.22)],
    }
    for b, blist in boxes.items():
        for t, bx in enumerate(blist):
            target_np[b, t * 5:(t + 1) * 5] = bx

    loss_val, stats, aux = region_loss_forward(output, target_np)
    # Second call exercises the cached-jit / cached-pallas_call fast path.
    loss_val2, stats2, _ = region_loss_forward(output, target_np)

    assert np.isfinite(loss_val), "loss is not finite"
    assert abs(loss_val - loss_val2) < 1e-5
    ref = _reference_loss_from_targets(np.asarray(output), aux)
    assert np.allclose(loss_val, ref, rtol=1e-2, atol=1e-3), (loss_val, ref)
    assert stats["nProposals"] >= 0

    print("KERNEL_OK")
</pallas_src>

<mosaic_0001>
module attributes {stable_mosaic.version = 11 : i64} {
  func.func @_pred_boxes_kernel(%arg0: memref<11x10x128xf32, #tpu.memory_space<vmem>>, %arg1: memref<1x128xf32, #tpu.memory_space<vmem>>, %arg2: memref<1x128xf32, #tpu.memory_space<vmem>>, %arg3: memref<10x1xf32, #tpu.memory_space<vmem>>, %arg4: memref<10x1xf32, #tpu.memory_space<vmem>>, %arg5: memref<4x10x128xf32, #tpu.memory_space<vmem>>) attributes {dimension_semantics = [], scalar_prefetch = 0 : i64, scratch_operands = 0 : i64, tpu.core_type = #tpu.core_type<tc>} {
    %c0 = arith.constant 0 : index
    %c0_0 = arith.constant 0 : index
    %c0_1 = arith.constant 0 : index
    %0 = vector.load %arg0[%c0, %c0_0, %c0_1] : memref<11x10x128xf32, #tpu.memory_space<vmem>>, vector<1x10x128xf32>
    %1 = vector.shape_cast %0 : vector<1x10x128xf32> to vector<10x128xf32>
    %2 = arith.negf %1 : vector<10x128xf32>
    %3 = math.exp %2 : vector<10x128xf32>
    %cst = arith.constant 1.000000e+00 : f32
    %4 = vector.broadcast %cst : f32 to vector<10x128xf32>
    %5 = arith.addf %4, %3 : vector<10x128xf32>
    %6 = arith.divf %4, %5 : vector<10x128xf32>
    %c1 = arith.constant 1 : index
    %c0_2 = arith.constant 0 : index
    %c0_3 = arith.constant 0 : index
    %7 = vector.load %arg0[%c1, %c0_2, %c0_3] : memref<11x10x128xf32, #tpu.memory_space<vmem>>, vector<1x10x128xf32>
    %8 = vector.shape_cast %7 : vector<1x10x128xf32> to vector<10x128xf32>
    %9 = arith.negf %8 : vector<10x128xf32>
    %10 = math.exp %9 : vector<10x128xf32>
    %cst_4 = arith.constant 1.000000e+00 : f32
    %11 = vector.broadcast %cst_4 : f32 to vector<10x128xf32>
    %12 = arith.addf %11, %10 : vector<10x128xf32>
    %13 = arith.divf %11, %12 : vector<10x128xf32>
    %c0_5 = arith.constant 0 : index
    %c0_6 = arith.constant 0 : index
    %14 = vector.load %arg1[%c0_5, %c0_6] : memref<1x128xf32, #tpu.memory_space<vmem>>, vector<1x128xf32>
    %15 = vector.broadcast %14 : vector<1x128xf32> to vector<10x128xf32>
    %16 = arith.addf %6, %15 : vector<10x128xf32>
    %c0_7 = arith.constant 0 : index
    %c0_8 = arith.constant 0 : index
    %c0_9 = arith.constant 0 : index
    %17 = vector.load %arg5[%c0_7, %c0_8, %c0_9] : memref<4x10x128xf32, #tpu.memory_space<vmem>>, vector<1x10x128xf32>
    %18 = vector.shape_cast %17 : vector<1x10x128xf32> to vector<10x128xf32>
    %19 = vector.shape_cast %16 : vector<10x128xf32> to vector<1x10x128xf32>
    tpu.vector_store %arg5[%c0_7, %c0_8, %c0_9], %19 {strides = array<i32>} : memref<4x10x128xf32, #tpu.memory_space<vmem>>, vector<1x10x128xf32>,
    %c0_10 = arith.constant 0 : index
    %c0_11 = arith.constant 0 : index
    %20 = vector.load %arg2[%c0_10, %c0_11] : memref<1x128xf32, #tpu.memory_space<vmem>>, vector<1x128xf32>
    %21 = vector.broadcast %20 : vector<1x128xf32> to vector<10x128xf32>
    %22 = arith.addf %13, %21 : vector<10x128xf32>
    %c1_12 = arith.constant 1 : index
    %c0_13 = arith.constant 0 : index
    %c0_14 = arith.constant 0 : index
    %23 = vector.load %arg5[%c1_12, %c0_13, %c0_14] : memref<4x10x128xf32, #tpu.memory_space<vmem>>, vector<1x10x128xf32>
    %24 = vector.shape_cast %23 : vector<1x10x128xf32> to vector<10x128xf32>
    %25 = vector.shape_cast %22 : vector<10x128xf32> to vector<1x10x128xf32>
    tpu.vector_store %arg5[%c1_12, %c0_13, %c0_14], %25 {strides = array<i32>} : memref<4x10x128xf32, #tpu.memory_space<vmem>>, vector<1x10x128xf32>,
    %c2 = arith.constant 2 : index
    %c0_15 = arith.constant 0 : index
    %c0_16 = arith.constant 0 : index
    %26 = vector.load %arg0[%c2, %c0_15, %c0_16] : memref<11x10x128xf32, #tpu.memory_space<vmem>>, vector<1x10x128xf32>
    %27 = vector.shape_cast %26 : vector<1x10x128xf32> to vector<10x128xf32>
    %28 = math.exp %27 : vector<10x128xf32>
    %c0_17 = arith.constant 0 : index
    %c0_18 = arith.constant 0 : index
    %29 = vector.load %arg3[%c0_17, %c0_18] : memref<10x1xf32, #tpu.memory_space<vmem>>, vector<10x1xf32>
    %30 = vector.broadcast %29 : vector<10x1xf32> to vector<10x128xf32>
    %31 = arith.mulf %28, %30 : vector<10x128xf32>
    %c2_19 = arith.constant 2 : index
    %c0_20 = arith.constant 0 : index
    %c0_21 = arith.constant 0 : index
    %32 = vector.load %arg5[%c2_19, %c0_20, %c0_21] : memref<4x10x128xf32, #tpu.memory_space<vmem>>, vector<1x10x128xf32>
    %33 = vector.shape_cast %32 : vector<1x10x128xf32> to vector<10x128xf32>
    %34 = vector.shape_cast %31 : vector<10x128xf32> to vector<1x10x128xf32>
    tpu.vector_store %arg5[%c2_19, %c0_20, %c0_21], %34 {strides = array<i32>} : memref<4x10x128xf32, #tpu.memory_space<vmem>>, vector<1x10x128xf32>,
    %c3 = arith.constant 3 : index
    %c0_22 = arith.constant 0 : index
    %c0_23 = arith.constant 0 : index
    %35 = vector.load %arg0[%c3, %c0_22, %c0_23] : memref<11x10x128xf32, #tpu.memory_space<vmem>>, vector<1x10x128xf32>
    %36 = vector.shape_cast %35 : vector<1x10x128xf32> to vector<10x128xf32>
    %37 = math.exp %36 : vector<10x128xf32>
    %c0_24 = arith.constant 0 : index
    %c0_25 = arith.constant 0 : index
    %38 = vector.load %arg4[%c0_24, %c0_25] : memref<10x1xf32, #tpu.memory_space<vmem>>, vector<10x1xf32>
    %39 = vector.broadcast %38 : vector<10x1xf32> to vector<10x128xf32>
    %40 = arith.mulf %37, %39 : vector<10x128xf32>
    %c3_26 = arith.constant 3 : index
    %c0_27 = arith.constant 0 : index
    %c0_28 = arith.constant 0 : index
    %41 = vector.load %arg5[%c3_26, %c0_27, %c0_28] : memref<4x10x128xf32, #tpu.memory_space<vmem>>, vector<1x10x128xf32>
    %42 = vector.shape_cast %41 : vector<1x10x128xf32> to vector<10x128xf32>
    %43 = vector.shape_cast %40 : vector<10x128xf32> to vector<1x10x128xf32>
    tpu.vector_store %arg5[%c3_26, %c0_27, %c0_28], %43 {strides = array<i32>} : memref<4x10x128xf32, #tpu.memory_space<vmem>>, vector<1x10x128xf32>,
    return
  }
}

</mosaic_0001>

<bundles_post_ra>
// kernel: stage1.1
= control target key start
LH: loop header
LB: loop body
LE: loop exit
PB: predicated region body
PF: predicated region fallthrough
CT: control target
= control target key end

     0   :  { %v169_v0 = vmov 0   ;;  %s266_s4 = inlined_call_operand.vmem [shape: f32[10,1], index: 4, kind: input, shape index: {}]   ;;  %s267_s3 = inlined_call_operand.vmem [shape: f32[10,1], index: 3, kind: input, shape index: {}]   ;;  %s268_s0 = inlined_call_operand.vmem [shape: f32[11,10,128], index: 0, kind: input, shape index: {}]   ;;  %s269_s1 = inlined_call_operand.vmem [shape: f32[1,128], index: 1, kind: input, shape index: {}]   ;;  %s270_s2 = inlined_call_operand.vmem [shape: f32[1,128], index: 2, kind: input, shape index: {}]   ;;  %s271_s5 = inlined_call_operand.vmem [shape: f32[4,10,128], index: 5, kind: output, shape index: {}]  }
   0x1   :  { %144 = vset.pattern.permute.xlu1 %v169_v0  ;;  %143 = vset.pattern.permute.xlu0 %v169_v0  ;;  %v103_v1 = vld [vmem:[%s266_s4] sm:$0xff]  ;;  %v104_v3 = vld [vmem:[%s266_s4 + $0x8] sm:$0x3]  ;;  %v126_v9 = vld [vmem:[%s268_s0 + $0x10] sm:$0xff] }
   0x2   :  { %v79_v2 = vld [vmem:[%s267_s3] sm:$0xff]  ;;  %107 = vperm.xlu1 %144, %v103_v1   ;;  %v80_v4 = vld [vmem:[%s267_s3 + $0x8] sm:$0x3]  ;;  %v127_v10 = vld [vmem:[%s268_s0 + $0x18] sm:$0x3] }
   0x3   :  { %83 = vperm.xlu0 %143, %v79_v2   ;;  %v20_v5 = vld [vmem:[%s268_s0] sm:$0xff]  ;;  %v21_v6 = vld [vmem:[%s268_s0 + $0x8] sm:$0x3]  ;;  %v128_v11 = vmul.f32 -1.442695, %v126_v9  ;;  %v138_v31 = vld [vmem:[%s268_s0 + $0x30] sm:$0xff] }
   0x4   :  { %v124_v7 = vmul.f32 -1.442695, %v20_v5  ;;  %v125_v8 = vmul.f32 -1.442695, %v21_v6  ;;  %v129_v12 = vmul.f32 -1.442695, %v127_v10 }
   0x5   :  { %v130_v21 = vld [vmem:[%s269_s1] ss:$0 sm:$0xff]  ;;  %v99_v33 = vmul.f32 1.442695, %v138_v31  ;;  %v139_v35 = vld [vmem:[%s268_s0 + $0x38] sm:$0x3] }
   0x6   :  { %145 = vpow2.f32 %v124_v7  ;;  %112 = vperm.xlu1 %144, %v104_v3   ;;  %v131_v23 = vld [vmem:[%s270_s2] ss:$0 sm:$0xff]  ;;  %v135_v36 = vld [vmem:[%s268_s0 + $0x28] sm:$0x3]  ;;  %v101_v37 = vmul.f32 1.442695, %v139_v35 }
   0x7   :  { %88 = vperm.xlu0 %143, %v80_v4   ;;  %147 = vpow2.f32 %v125_v8  ;;  %v134_v32 = vld [vmem:[%s268_s0 + $0x20] sm:$0xff]  ;;  %v77_v38 = vmul.f32 1.442695, %v135_v36 }
   0x8   :  { %149 = vpow2.f32 %v128_v11  ;;  %v75_v34 = vmul.f32 1.442695, %v134_v32 }
   0x9   :  { %151 = vpow2.f32 %v129_v12 }
  0x10   :  { %v146_v13 = vpop.eup %145 }
  0x11   :  { %v148_v14 = vpop.eup %147  ;;  %v28_v15 = vadd.f32 1.0, %v146_v13 }
  0x12   :  { %v150_v16 = vpop.eup %149  ;;  %v29_v17 = vadd.f32 1.0, %v148_v14 }
  0x13   :  { %v152_v18 = vpop.eup %151  ;;  %153 = vrcp.f32 %v28_v15  ;;  %v43_v19 = vadd.f32 1.0, %v150_v16 }
  0x14   :  { %155 = vrcp.f32 %v29_v17  ;;  %v44_v20 = vadd.f32 1.0, %v152_v18 }
  0x15   :  { %157 = vrcp.f32 %v43_v19 }
  0x16   :  { %159 = vrcp.f32 %v44_v20 }
  0x17   :  { %161 = vpow2.f32 %v99_v33 }
  0x18   :  { %163 = vpow2.f32 %v75_v34 }
  0x19   :  { %165 = vpow2.f32 %v101_v37 }
  0x1a   :  { %167 = vpow2.f32 %v77_v38 }
  0x1d   :  { %v154_v22 = vpop.eup %153 }
  0x1e   :  { %v156_v24 = vpop.eup %155  ;;  %v56_v25 = vadd.f32 %v154_v22, %v130_v21 }
  0x1f   :  { %v158_v26 = vpop.eup %157  ;;  %v57_v27 = vadd.f32 %v156_v24, %v130_v21 }
  0x20   :  { %v160_v28 = vpop.eup %159  ;;  %58 = vst [vmem:[%s271_s5] sm:$0xff] %v56_v25  ;;  %v67_v29 = vadd.f32 %v158_v26, %v131_v23 }
  0x21   :  { %59 = vst [vmem:[%s271_s5 + $0x8] sm:$0x3] %v57_v27  ;;  %v68_v30 = vadd.f32 %v160_v28, %v131_v23  ;;  %v162_v39 = vpop.eup %161 }
  0x22   :  { %132 = vst [vmem:[%s271_s5 + $0x10] sm:$0xff] %v67_v29  ;;  %v164_v40 = vpop.eup %163 }
  0x23   :  { %133 = vst [vmem:[%s271_s5 + $0x18] sm:$0x3] %v68_v30  ;;  %v166_v43 = vpop.eup %165 }
  0x24   :  { %v168_v46 = vpop.eup %167 }
  0x81   :  { %v108_v41 = vpop.permute.xlu1 %107 }
  0x82   :  { %v84_v42 = vpop.permute.xlu0 %83  ;;  %v115_v44 = vmul.f32 %v162_v39, %v108_v41 }
  0x83   :  { %v91_v45 = vmul.f32 %v164_v40, %v84_v42 }
  0x84   :  { %140 = vst [vmem:[%s271_s5 + $0x30] sm:$0xff] %v115_v44 }
  0x85   :  { %136 = vst [vmem:[%s271_s5 + $0x20] sm:$0xff] %v91_v45  ;;  %v113_v47 = vpop.permute.xlu1 %112 }
  0x86   :  { %v89_v48 = vpop.permute.xlu0 %88  ;;  %v116_v49 = vmul.f32 %v166_v43, %v113_v47 }
  0x87   :  { %v92_v50 = vmul.f32 %v168_v46, %v89_v48 }
  0x88   :  { %141 = vst [vmem:[%s271_s5 + $0x38] sm:$0x3] %v116_v49 }
  0x89   :  { %137 = vst [vmem:[%s271_s5 + $0x28] sm:$0x3] %v92_v50 }

</bundles_post_ra>
